<compile_context>
chip_gen: v5e
topology: v5e:2x2
jax: 0.10.0
libtpu: 0.0.40
codegen_flags: <defaults>
</compile_context>

<pallas_src>
import functools

import jax
import jax.numpy as jnp
from jax.experimental import pallas as pl
from jax.experimental.pallas import tpu as pltpu


def _policy_forward_kernel(xt_ref, w1_ref, b1_ref, w2_ref, b2_ref,
                           w3_ref, b3_ref, a_ref, out_ref, *,
                           num_chunks, chunk, matmul_dtype):
    # xt_ref : [S, TB]  state^T (batch on lanes)
    # w1_ref : [H, S]   b1_ref : [H, 1]
    # w2_ref : [H, H]   b2_ref : [H, 1]
    # w3_ref : [H, A]   b3_ref : [A, 1]
    # a_ref  : [1, TB]  int32 action indices
    # out_ref: [1, TB]  gathered log-prob (lane-dense store)
    S = xt_ref.shape[0]
    A = w3_ref.shape[1]

    # Weights stay VMEM-resident across the grid; load once per step.
    w1 = w1_ref[...]
    b1 = b1_ref[...]
    w2 = w2_ref[...].astype(matmul_dtype)
    b2 = b2_ref[...]
    w3 = w3_ref[...]
    b3 = b3_ref[...]

    if A == 2:
        # CartPole fast path: only the logit difference is needed.
        w3d = w3[:, 1:2] - w3[:, 0:1]                       # [H, 1]
        b3d = b3[1:2, :] - b3[0:1, :]                       # [1, 1]

    def body(c, carry):
        off = pl.multiple_of(c * chunk, 128)
        xt = xt_ref[:, pl.ds(off, chunk)]                   # [S, CH]
        act = a_ref[:, pl.ds(off, chunk)]                   # [1, CH]

        # ---- layer 1 ----
        if S >= 8:
            # Big-enough contraction: use the (otherwise idle) MXU.
            h1t = jnp.dot(w1, xt, preferred_element_type=jnp.float32)
        else:
            # Tiny K (CartPole S=4): unrolled broadcast-MACs on the VPU.
            h1t = w1[:, 0:1] * xt[0:1, :]
            for k in range(1, S):
                h1t = h1t + w1[:, k:k + 1] * xt[k:k + 1, :]
        h1t = jnp.maximum(h1t + b1, 0.0)                    # [H, CH]

        # ---- layer 2: the only sizeable matmul -> MXU ----
        h2t = jnp.dot(w2, h1t.astype(matmul_dtype),
                      preferred_element_type=jnp.float32)
        h2t = jnp.maximum(h2t + b2, 0.0)                    # [H, CH]

        # ---- layer 3 + log(softmax(.)[action]) ----
        if A == 2:
            d = jnp.sum(h2t * w3d, axis=0, keepdims=True) + b3d     # [1, CH]
            # logsumexp over {0, d} == softplus(d), computed stably.
            lse = jnp.maximum(d, 0.0) + jnp.log(1.0 + jnp.exp(-jnp.abs(d)))
            res = jnp.where(act == 1, d, 0.0) - lse
        else:
            logits = []
            for a in range(A):
                la = jnp.sum(h2t * w3[:, a:a + 1], axis=0, keepdims=True)
                logits.append(la + b3[a:a + 1, :])          # [1, CH]
            m = logits[0]
            for a in range(1, A):
                m = jnp.maximum(m, logits[a])
            den = jnp.exp(logits[0] - m)
            for a in range(1, A):
                den = den + jnp.exp(logits[a] - m)
            lse = m + jnp.log(den)
            res = logits[0] - lse
            for a in range(1, A):
                res = jnp.where(act == a, logits[a] - lse, res)

        out_ref[:, pl.ds(off, chunk)] = res
        return carry

    # Sub-chunk loop bounds the activation live-set (<= ~16-32 vregs) while the
    # large DMA'd block amortizes per-grid-step overhead.
    jax.lax.fori_loop(0, num_chunks, body, 0, unroll=True)


def _choose_tile_b(B, requested):
    """Lane-tile (multiple of 128): big enough to amortize step overhead,
    never padding a small batch past 128 lanes, and >=2 grid steps for large
    batches so v7x's two TensorCores both get work."""
    t = max(128, min(int(requested), 4096))
    t = (t // 128) * 128
    t = min(t, pl.cdiv(B, 128) * 128)           # don't over-pad tiny batches
    if B > 128:
        half = pl.cdiv(pl.cdiv(B, 2), 128) * 128
        t = min(t, half)                        # grid_b >= 2 (megacore)
    return max(t, 128)


def policy_forward(state, action, params, *, tile_b=1024,
                   matmul_dtype=jnp.float32):
    """state: [B, S] f32, action: [B, 1] int, params: dict. Returns [B, 1] f32.

    matmul_dtype=jnp.bfloat16 enables the MXU-native layer-2 path (needs
    ~1e-3 tolerance vs an f32 reference); default keeps full f32 fidelity.
    """
    w1, b1, w2, b2, w3, b3 = (params["w1"], params["b1"], params["w2"],
                              params["b2"], params["w3"], params["b3"])
    B, S = state.shape
    H = w1.shape[1]
    A = w3.shape[1]

    tile_b = _choose_tile_b(B, tile_b)
    grid_b = pl.cdiv(B, tile_b)
    Bp = grid_b * tile_b
    chunk = 512 if (tile_b % 512 == 0) else tile_b
    num_chunks = tile_b // chunk

    # Layout plumbing: batch onto the lane axis.  Single fused transpose+pad
    # (no zeros+scatter round trip); no pad op when B is already aligned.
    # TODO(synk): if the caller can hold state in [S, B] layout, the transpose
    # disappears entirely.
    xt = state.T.astype(jnp.float32)
    act = action.reshape(1, B).astype(jnp.int32)
    if Bp != B:
        xt = jnp.pad(xt, ((0, 0), (0, Bp - B)))
        act = jnp.pad(act, ((0, 0), (0, Bp - B)))

    w1t, b1c = w1.T, b1.reshape(H, 1)
    w2t, b2c = w2.T, b2.reshape(H, 1)
    b3c = b3.reshape(A, 1)

    kernel = functools.partial(_policy_forward_kernel,
                               num_chunks=num_chunks, chunk=chunk,
                               matmul_dtype=matmul_dtype)

    def resident(arr):  # same block every grid step -> stays VMEM-resident
        return pl.BlockSpec(arr.shape, lambda i: (0, 0))

    out = pl.pallas_call(
        kernel,
        out_shape=jax.ShapeDtypeStruct((1, Bp), jnp.float32),
        grid=(grid_b,),
        in_specs=[
            pl.BlockSpec((S, tile_b), lambda i: (0, i)),       # state^T
            resident(w1t), resident(b1c),
            resident(w2t), resident(b2c),
            resident(w3), resident(b3c),
            pl.BlockSpec((1, tile_b), lambda i: (0, i)),       # action
        ],
        out_specs=pl.BlockSpec((1, tile_b), lambda i: (0, i)),
        compiler_params=pltpu.CompilerParams(
            dimension_semantics=("parallel",)),
    )(xt, w1t, b1c, w2t, b2c, w3, b3c, act)

    # Keep the PyTorch [B, 1] contract (consumers that accept [1, B] can take
    # `out[:, :B]` directly and skip this reshape).
    return out[0, :B].reshape(B, 1)


def init_params(key, state_size, hidden, actions):
    """Deterministic parameter init (uniform, like torch.nn.Linear default)."""
    ks = jax.random.split(key, 6)

    def lin(kw, kb, fan_in, fan_out):
        bound = 1.0 / jnp.sqrt(fan_in)
        w = jax.random.uniform(kw, (fan_in, fan_out), jnp.float32, -bound, bound)
        b = jax.random.uniform(kb, (1, fan_out), jnp.float32, -bound, bound)
        return w, b

    w1, b1 = lin(ks[0], ks[1], state_size, hidden)
    w2, b2 = lin(ks[2], ks[3], hidden, hidden)
    w3, b3 = lin(ks[4], ks[5], hidden, actions)
    return {"w1": w1, "b1": b1, "w2": w2, "b2": b2, "w3": w3, "b3": b3}


def policy_forward_ref(state, action, p):
    """Pure-JAX reference matching the PyTorch forward."""
    h1 = jnp.maximum(state @ p["w1"] + p["b1"], 0.0)
    h2 = jnp.maximum(h1 @ p["w2"] + p["b2"], 0.0)
    logits = h2 @ p["w3"] + p["b3"]
    probs = jax.nn.softmax(logits, axis=1)
    gathered = jnp.take_along_axis(probs, action, axis=1)
    return jnp.log(gathered)


if __name__ == "__main__":
    # CartPole-like sizes: state_size=4, actions=2, hidden=32
    STATE_SIZE, ACTIONS, HIDDEN = 4, 2, 32

    key = jax.random.PRNGKey(0)
    k_params, k_state, k_action = jax.random.split(key, 3)
    params = init_params(k_params, STATE_SIZE, HIDDEN, ACTIONS)

    # 1) Small rollout batch (B=8): single grid step, 128-lane tile.
    B_small = 8
    state_s = jax.random.normal(k_state, (B_small, STATE_SIZE), jnp.float32)
    action_s = jax.random.randint(k_action, (B_small, 1), 0, ACTIONS, jnp.int32)
    out_s = jax.block_until_ready(policy_forward(state_s, action_s, params))
    ref_s = policy_forward_ref(state_s, action_s, params)
    assert out_s.shape == (B_small, 1)
    assert jnp.allclose(out_s, ref_s, atol=1e-4, rtol=1e-4), (out_s, ref_s)

    # 2) Training-scale batch (non-multiple of the tile): exercises the
    #    multi-step grid, the in-kernel 512-lane chunk loop and the padding path.
    B_big = 2500
    ks2, ka2 = jax.random.split(jax.random.PRNGKey(1))
    state_b = jax.random.normal(ks2, (B_big, STATE_SIZE), jnp.float32)
    action_b = jax.random.randint(ka2, (B_big, 1), 0, ACTIONS, jnp.int32)
    out_b = jax.block_until_ready(policy_forward(state_b, action_b, params))
    ref_b = policy_forward_ref(state_b, action_b, params)
    assert out_b.shape == (B_big, 1)
    assert jnp.allclose(out_b, ref_b, atol=1e-4, rtol=1e-4)

    # TODO(synk): sample_action / logprob_action (Categorical sampling) are not
    # part of forward(); could be fused later via pltpu.prng_* if needed.
    print("KERNEL_OK")
</pallas_src>

<mosaic_0001>
module attributes {stable_mosaic.version = 11 : i64} {
  func.func @_policy_forward_kernel(%arg0: i32, %arg1: memref<4x128xf32, #tpu.memory_space<vmem>>, %arg2: memref<32x4xf32, #tpu.memory_space<vmem>>, %arg3: memref<32x1xf32, #tpu.memory_space<vmem>>, %arg4: memref<32x32xf32, #tpu.memory_space<vmem>>, %arg5: memref<32x1xf32, #tpu.memory_space<vmem>>, %arg6: memref<32x2xf32, #tpu.memory_space<vmem>>, %arg7: memref<2x1xf32, #tpu.memory_space<vmem>>, %arg8: memref<1x128xi32, #tpu.memory_space<vmem>>, %arg9: memref<1x128xf32, #tpu.memory_space<vmem>>) attributes {dimension_semantics = [#tpu.dimension_semantics<parallel>], iteration_bounds = array<i64: 1>, scalar_prefetch = 0 : i64, scratch_operands = 0 : i64, tpu.core_type = #tpu.core_type<tc>, window_params = [{transform_indices = @transform_0, window_bounds = array<i64: 4, 128>}, {pipeline_mode = #tpu.pipeline_mode<synchronous>, transform_indices = @transform_1, window_bounds = array<i64: 32, 4>}, {pipeline_mode = #tpu.pipeline_mode<synchronous>, transform_indices = @transform_2, window_bounds = array<i64: 32, 1>}, {pipeline_mode = #tpu.pipeline_mode<synchronous>, transform_indices = @transform_3, window_bounds = array<i64: 32, 32>}, {pipeline_mode = #tpu.pipeline_mode<synchronous>, transform_indices = @transform_4, window_bounds = array<i64: 32, 1>}, {pipeline_mode = #tpu.pipeline_mode<synchronous>, transform_indices = @transform_5, window_bounds = array<i64: 32, 2>}, {pipeline_mode = #tpu.pipeline_mode<synchronous>, transform_indices = @transform_6, window_bounds = array<i64: 2, 1>}, {transform_indices = @transform_7, window_bounds = array<i64: 1, 128>}, {transform_indices = @transform_8, window_bounds = array<i64: 1, 128>}]} {
    %c0 = arith.constant 0 : index
    %c0_0 = arith.constant 0 : index
    %0 = vector.load %arg2[%c0, %c0_0] : memref<32x4xf32, #tpu.memory_space<vmem>>, vector<32x4xf32>
    %c0_1 = arith.constant 0 : index
    %c0_2 = arith.constant 0 : index
    %1 = vector.load %arg3[%c0_1, %c0_2] : memref<32x1xf32, #tpu.memory_space<vmem>>, vector<32x1xf32>
    %c0_3 = arith.constant 0 : index
    %c0_4 = arith.constant 0 : index
    %2 = vector.load %arg4[%c0_3, %c0_4] : memref<32x32xf32, #tpu.memory_space<vmem>>, vector<32x32xf32>
    %c0_5 = arith.constant 0 : index
    %c0_6 = arith.constant 0 : index
    %3 = vector.load %arg5[%c0_5, %c0_6] : memref<32x1xf32, #tpu.memory_space<vmem>>, vector<32x1xf32>
    %c0_7 = arith.constant 0 : index
    %c0_8 = arith.constant 0 : index
    %4 = vector.load %arg6[%c0_7, %c0_8] : memref<32x2xf32, #tpu.memory_space<vmem>>, vector<32x2xf32>
    %c0_9 = arith.constant 0 : index
    %c0_10 = arith.constant 0 : index
    %5 = vector.load %arg7[%c0_9, %c0_10] : memref<2x1xf32, #tpu.memory_space<vmem>>, vector<2x1xf32>
    %6 = vector.extract_strided_slice %4 {offsets = [0, 1], sizes = [32, 1], strides = [1, 1]} : vector<32x2xf32> to vector<32x1xf32>
    %7 = vector.extract_strided_slice %4 {offsets = [0, 0], sizes = [32, 1], strides = [1, 1]} : vector<32x2xf32> to vector<32x1xf32>
    %8 = arith.subf %6, %7 : vector<32x1xf32>
    %9 = vector.extract_strided_slice %5 {offsets = [1, 0], sizes = [1, 1], strides = [1, 1]} : vector<2x1xf32> to vector<1x1xf32>
    %10 = vector.extract_strided_slice %5 {offsets = [0, 0], sizes = [1, 1], strides = [1, 1]} : vector<2x1xf32> to vector<1x1xf32>
    %11 = arith.subf %9, %10 : vector<1x1xf32>
    %c0_i32 = arith.constant 0 : i32
    %c128_i32 = arith.constant 128 : i32
    %12 = arith.muli %c0_i32, %c128_i32 : i32
    %13 = tpu.assume_multiple %12, 128 : i32
    %c0_11 = arith.constant 0 : index
    %14 = arith.index_cast %13 : i32 to index
    %15 = vector.load %arg1[%c0_11, %14] : memref<4x128xf32, #tpu.memory_space<vmem>>, vector<4x128xf32>
    %c0_12 = arith.constant 0 : index
    %16 = arith.index_cast %13 : i32 to index
    %17 = vector.load %arg8[%c0_12, %16] : memref<1x128xi32, #tpu.memory_space<vmem>>, vector<1x128xi32>
    %18 = vector.extract_strided_slice %0 {offsets = [0, 0], sizes = [32, 1], strides = [1, 1]} : vector<32x4xf32> to vector<32x1xf32>
    %19 = vector.extract_strided_slice %15 {offsets = [0, 0], sizes = [1, 128], strides = [1, 1]} : vector<4x128xf32> to vector<1x128xf32>
    %20 = vector.broadcast %18 : vector<32x1xf32> to vector<32x128xf32>
    %21 = vector.broadcast %19 : vector<1x128xf32> to vector<32x128xf32>
    %22 = arith.mulf %20, %21 : vector<32x128xf32>
    %23 = vector.extract_strided_slice %0 {offsets = [0, 1], sizes = [32, 1], strides = [1, 1]} : vector<32x4xf32> to vector<32x1xf32>
    %24 = vector.extract_strided_slice %15 {offsets = [1, 0], sizes = [1, 128], strides = [1, 1]} : vector<4x128xf32> to vector<1x128xf32>
    %25 = vector.broadcast %23 : vector<32x1xf32> to vector<32x128xf32>
    %26 = vector.broadcast %24 : vector<1x128xf32> to vector<32x128xf32>
    %27 = arith.mulf %25, %26 : vector<32x128xf32>
    %28 = arith.addf %22, %27 : vector<32x128xf32>
    %29 = vector.extract_strided_slice %0 {offsets = [0, 2], sizes = [32, 1], strides = [1, 1]} : vector<32x4xf32> to vector<32x1xf32>
    %30 = vector.extract_strided_slice %15 {offsets = [2, 0], sizes = [1, 128], strides = [1, 1]} : vector<4x128xf32> to vector<1x128xf32>
    %31 = vector.broadcast %29 : vector<32x1xf32> to vector<32x128xf32>
    %32 = vector.broadcast %30 : vector<1x128xf32> to vector<32x128xf32>
    %33 = arith.mulf %31, %32 : vector<32x128xf32>
    %34 = arith.addf %28, %33 : vector<32x128xf32>
    %35 = vector.extract_strided_slice %0 {offsets = [0, 3], sizes = [32, 1], strides = [1, 1]} : vector<32x4xf32> to vector<32x1xf32>
    %36 = vector.extract_strided_slice %15 {offsets = [3, 0], sizes = [1, 128], strides = [1, 1]} : vector<4x128xf32> to vector<1x128xf32>
    %37 = vector.broadcast %35 : vector<32x1xf32> to vector<32x128xf32>
    %38 = vector.broadcast %36 : vector<1x128xf32> to vector<32x128xf32>
    %39 = arith.mulf %37, %38 : vector<32x128xf32>
    %40 = arith.addf %34, %39 : vector<32x128xf32>
    %41 = vector.broadcast %1 : vector<32x1xf32> to vector<32x128xf32>
    %42 = arith.addf %40, %41 : vector<32x128xf32>
    %cst = arith.constant 0.000000e+00 : f32
    %43 = vector.broadcast %cst : f32 to vector<32x128xf32>
    %44 = arith.maximumf %42, %43 : vector<32x128xf32>
    %cst_13 = arith.constant dense<0.000000e+00> : vector<32x128xf32>
    %45 = tpu.matmul %2, %44, %cst_13 {dimension_numbers = #tpu.dot_dimension_numbers<[1], [0], [0], [1], [0, 0, 1, 1], [], []>} : vector<32x32xf32>, vector<32x128xf32>, vector<32x128xf32> -> vector<32x128xf32>
    %46 = vector.broadcast %3 : vector<32x1xf32> to vector<32x128xf32>
    %47 = arith.addf %45, %46 : vector<32x128xf32>
    %cst_14 = arith.constant 0.000000e+00 : f32
    %48 = vector.broadcast %cst_14 : f32 to vector<32x128xf32>
    %49 = arith.maximumf %47, %48 : vector<32x128xf32>
    %50 = vector.broadcast %8 : vector<32x1xf32> to vector<32x128xf32>
    %51 = arith.mulf %49, %50 : vector<32x128xf32>
    %cst_15 = arith.constant dense<0.000000e+00> : vector<128xf32>
    %52 = vector.multi_reduction <add>, %51, %cst_15 [0] : vector<32x128xf32> to vector<128xf32>
    %53 = vector.shape_cast %52 : vector<128xf32> to vector<1x128xf32>
    %54 = vector.broadcast %11 : vector<1x1xf32> to vector<1x128xf32>
    %55 = arith.addf %53, %54 : vector<1x128xf32>
    %cst_16 = arith.constant 0.000000e+00 : f32
    %56 = vector.broadcast %cst_16 : f32 to vector<1x128xf32>
    %57 = arith.maximumf %55, %56 : vector<1x128xf32>
    %58 = math.absf %55 : vector<1x128xf32>
    %cst_17 = arith.constant 0.000000e+00 : f32
    %59 = vector.broadcast %cst_17 : f32 to vector<1x128xf32>
    %60 = arith.subf %59, %58 : vector<1x128xf32>
    %61 = math.exp %60 : vector<1x128xf32>
    %cst_18 = arith.constant 1.000000e+00 : f32
    %62 = vector.broadcast %cst_18 : f32 to vector<1x128xf32>
    %63 = arith.addf %62, %61 : vector<1x128xf32>
    %64 = math.log %63 : vector<1x128xf32>
    %65 = arith.addf %57, %64 : vector<1x128xf32>
    %c1_i32 = arith.constant 1 : i32
    %66 = vector.broadcast %c1_i32 : i32 to vector<1x128xi32>
    %67 = arith.cmpi eq, %17, %66 : vector<1x128xi32>
    %cst_19 = arith.constant 0.000000e+00 : f32
    %68 = vector.broadcast %cst_19 : f32 to vector<1x128xf32>
    %69 = arith.select %67, %55, %68 : vector<1x128xi1>, vector<1x128xf32>
    %70 = arith.subf %69, %65 : vector<1x128xf32>
    %c0_20 = arith.constant 0 : index
    %71 = arith.index_cast %13 : i32 to index
    %72 = vector.load %arg9[%c0_20, %71] : memref<1x128xf32, #tpu.memory_space<vmem>>, vector<1x128xf32>
    tpu.vector_store %arg9[%c0_20, %71], %70 {strides = array<i32>} : memref<1x128xf32, #tpu.memory_space<vmem>>, vector<1x128xf32>,
    %c1_i32_21 = arith.constant 1 : i32
    return
  }
  func.func @transform_0(%arg0: i32) -> (i32, i32) {
    %c0_i32 = arith.constant 0 : i32
    %c0_i32_0 = arith.constant 0 : i32
    return %c0_i32, %arg0 : i32, i32
  }
  func.func @transform_1(%arg0: i32) -> (i32, i32) {
    %c0_i32 = arith.constant 0 : i32
    %c0_i32_0 = arith.constant 0 : i32
    %c0_i32_1 = arith.constant 0 : i32
    return %c0_i32, %c0_i32_0 : i32, i32
  }
  func.func @transform_2(%arg0: i32) -> (i32, i32) {
    %c0_i32 = arith.constant 0 : i32
    %c0_i32_0 = arith.constant 0 : i32
    %c0_i32_1 = arith.constant 0 : i32
    return %c0_i32, %c0_i32_0 : i32, i32
  }
  func.func @transform_3(%arg0: i32) -> (i32, i32) {
    %c0_i32 = arith.constant 0 : i32
    %c0_i32_0 = arith.constant 0 : i32
    %c0_i32_1 = arith.constant 0 : i32
    return %c0_i32, %c0_i32_0 : i32, i32
  }
  func.func @transform_4(%arg0: i32) -> (i32, i32) {
    %c0_i32 = arith.constant 0 : i32
    %c0_i32_0 = arith.constant 0 : i32
    %c0_i32_1 = arith.constant 0 : i32
    return %c0_i32, %c0_i32_0 : i32, i32
  }
  func.func @transform_5(%arg0: i32) -> (i32, i32) {
    %c0_i32 = arith.constant 0 : i32
    %c0_i32_0 = arith.constant 0 : i32
    %c0_i32_1 = arith.constant 0 : i32
    return %c0_i32, %c0_i32_0 : i32, i32
  }
  func.func @transform_6(%arg0: i32) -> (i32, i32) {
    %c0_i32 = arith.constant 0 : i32
    %c0_i32_0 = arith.constant 0 : i32
    %c0_i32_1 = arith.constant 0 : i32
    return %c0_i32, %c0_i32_0 : i32, i32
  }
  func.func @transform_7(%arg0: i32) -> (i32, i32) {
    %c0_i32 = arith.constant 0 : i32
    %c0_i32_0 = arith.constant 0 : i32
    return %c0_i32, %arg0 : i32, i32
  }
  func.func @transform_8(%arg0: i32) -> (i32, i32) {
    %c0_i32 = arith.constant 0 : i32
    %c0_i32_0 = arith.constant 0 : i32
    return %c0_i32, %arg0 : i32, i32
  }
}

</mosaic_0001>

<bundles_post_ra>
// kernel: tpu_custom_call.1
= control target key start
LH: loop header
LB: loop body
LE: loop exit
PB: predicated region body
PF: predicated region fallthrough
CT: control target
= control target key end

     0   :  { %v423_v2 = vmov 2   ;;  %v424_v3 = vmov 0   ;;  %s571_s0 = inlined_call_operand.vmem [shape: f32[4,128], index: 0, kind: input, shape index: {}]   ;;  %s572_s1 = inlined_call_operand.vmem [shape: f32[32,4], index: 1, kind: input, shape index: {}]   ;;  %s573_s2 = inlined_call_operand.vmem [shape: f32[32,1], index: 2, kind: input, shape index: {}]   ;;  %s574_s3 = inlined_call_operand.vmem [shape: f32[32,32], index: 3, kind: input, shape index: {}]   ;;  %s575_s4 = inlined_call_operand.vmem [shape: f32[32,1], index: 4, kind: input, shape index: {}]   ;;  %s576_s5 = inlined_call_operand.vmem [shape: f32[32,2], index: 5, kind: input, shape index: {}]   ;;  %s577_s6 = inlined_call_operand.vmem [shape: f32[2,1], index: 6, kind: input, shape index: {}]   ;;  %s578_s7 = inlined_call_operand.vmem [shape: s32[1,128], index: 7, kind: input, shape index: {}]   ;;  %s579_s8 = inlined_call_operand.hbm [shape: f32[1,128], index: 8, kind: output, shape index: {}]  }
   0x1   :  { %v33_v0 = vld [vmem:[%s572_s1 + $0x18] sm:$0xff]  ;;  %v32_v1 = vld [vmem:[%s572_s1 + $0x10] sm:$0xff]  ;;  %375 = vset.pattern.permute.xlu2 %v423_v2  ;;  %373 = vset.pattern.permute.xlu1 %v424_v3 }
   0x2   :  { %13 = vsyncpa [#allocation3], 0  ;;  %371 = vset.pattern.permute.xlu0 %v424_v3  ;;  %140 = vperm.xlu2 %375, %v33_v0   ;;  %v31_v4 = vld [vmem:[%s572_s1 + $0x8] sm:$0xff]  ;;  %v425_v5 = vmov 1   ;;  %v426_v6 = vmov 3   ;;  %v30_v7 = vld [vmem:[%s572_s1] sm:$0xff] }
   0x3   :  { %94 = vperm.xlu0 %371, %v33_v0   ;;  %89 = vperm.xlu1 %373, %v32_v1   ;;  %v35_v8 = vld [vmem:[%s573_s2 + $0x8] sm:$0xff]  ;;  %v497_v9 = vld [vmem:[%s576_s5 + $0x18] sm:$0xff]  ;;  %s427_s18 = smov 1   ;;  %v44_v11 = vld [vmem:[%s575_s4 + $0x10] sm:$0xff]  ;;  %vm225_vm0 = vcmask 261120   ;;  %s428_s22 = smov [#allocation2]  }
   0x4   :  { %v37_v10 = vld [vmem:[%s573_s2 + $0x18] sm:$0xff]  ;;  %v36_v12 = vld [vmem:[%s573_s2 + $0x10] sm:$0xff]  ;;  %v34_v13 = vld [vmem:[%s573_s2] sm:$0xff]  ;;  %s338_s23 = sshll.u32 %s428_s22, 4  ;;  %s340_s26 = sshll.u32 %s579_s8, 4  ;;  %s339_s23 = int_to_ptr.vmem [resolvable:$true] %s338_s23  ;;  %s341_s26 = int_to_ptr.hbm [resolvable:$true] %s340_s26 }
   0x5   :  { %v516_v14 = vld [vmem:[%s576_s5] sm:$0xff]  ;;  %v523_v15 = vld [vmem:[%s576_s5 + $0x8] sm:$0xff]  ;;  %v528_v16 = vld [vmem:[%s576_s5 + $0x10] sm:$0xff] }
   0x6   :  { %v42_v17 = vld [vmem:[%s575_s4] sm:$0xff]  ;;  %v43_v18 = vld [vmem:[%s575_s4 + $0x8] sm:$0xff]  ;;  %v45_v19 = vld [vmem:[%s575_s4 + $0x18] sm:$0xff] }
   0x7   :  { %v75_v26 = vld [vmem:[%s571_s0] sm:$0xf] }
   0x8   :  { %v118_v27 = vperm.slane %v75_v26, 1  ;;  %v97_v28 = vperm.slane %v75_v26, 0  ;;  %v143_v33 = vperm.slane %v75_v26, 2  ;;  %v168_v38 = vperm.slane %v75_v26, 3 }
   0xa   :  { %376 = vset.pattern.permute.xlu2 %v424_v3 }
   0xb   :  { %372 = vset.pattern.permute.xlu0 %v425_v5  ;;  %374 = vset.pattern.permute.xlu1 %v425_v5 }
   0xc   :  { %115 = vperm.xlu0 %372, %v33_v0   ;;  %111 = vperm.xlu1 %374, %v32_v1  }
   0xd   :  { %84 = vperm.xlu2 %376, %v31_v4  }
  0x14   :  { %378 = vset.pattern.permute.xlu0 %v426_v6  ;;  %107 = vperm.xlu1 %374, %v31_v4  }
  0x15   :  { %377 = vset.pattern.permute.xlu2 %v423_v2  ;;  %165 = vperm.xlu0 %378, %v33_v0  }
  0x16   :  { %136 = vperm.xlu2 %377, %v32_v1  }
  0x1c   :  { %379 = vset.pattern.permute.xlu1 %v424_v3 }
  0x1d   :  { %79 = vperm.xlu1 %379, %v30_v7   ;;  %383 = vset.pattern.permute.xlu0 %v423_v2 }
  0x1e   :  { %380 = vset.pattern.permute.xlu2 %v425_v5  ;;  %128 = vperm.xlu0 %383, %v30_v7  }
  0x1f   :  { %103 = vperm.xlu2 %380, %v30_v7  }
  0x25   :  { %381 = vset.pattern.permute.xlu1 %v423_v2 }
  0x26   :  { %132 = vperm.xlu1 %381, %v31_v4   ;;  %386 = vset.pattern.permute.xlu0 %v424_v3 }
  0x27   :  { %382 = vset.pattern.permute.xlu2 %v426_v6  ;;  %184 = vperm.xlu0 %386, %v35_v8  }
  0x28   :  { %161 = vperm.xlu2 %382, %v32_v1  }
  0x2e   :  { %384 = vset.pattern.permute.xlu1 %v426_v6 }
  0x2f   :  { %157 = vperm.xlu1 %384, %v31_v4   ;;  %61 = vrot.lane.b32.xlu0 %v497_v9, %s427_s18 }
  0x30   :  { %385 = vset.pattern.permute.xlu2 %v424_v3 }
  0x31   :  { %194 = vperm.xlu2 %385, %v37_v10  }
  0x37   :  { %153 = vperm.xlu1 %384, %v30_v7   ;;  %217 = vperm.xlu0 %386, %v44_v11  }
  0x39   :  { %189 = vperm.xlu2 %385, %v36_v12  }
  0x3f   :  { %387 = vset.pattern.permute.xlu1 %v424_v3  ;;  %389 = vset.pattern.permute.xlu0 %v425_v5 }
  0x40   :  { %179 = vperm.xlu1 %387, %v34_v13  }
  0x41   :  { %55 = vrot.lane.b32.xlu2 %v516_v14, %s427_s18 }
  0x48   :  { %57 = vrot.lane.b32.xlu1 %v523_v15, %s427_s18 }
  0x49   :  { %59 = vrot.lane.b32.xlu2 %v528_v16, %s427_s18 }
  0x50   :  { %207 = vperm.xlu1 %387, %v42_v17  }
  0x51   :  { %212 = vperm.xlu2 %385, %v43_v18  }
  0x58   :  { %222 = vperm.xlu1 %387, %v45_v19   ;;  %v50_v19 = vld [vmem:[%s577_s6] sm:$0x3] }
  0x59   :  { %388 = vset.pattern.permute.xlu2 %v425_v5 }
  0x5c   :  { %v141_v20 = vpop.permute.xlu2 %140 }
  0x5d   :  { %v147_v36 = vmul.f32 %v143_v33, %v141_v20 }
  0x60   :  { %390 = vset.pattern.permute.xlu1 %v425_v5 }
  0x67   :  { %v85_v21 = vpop.permute.xlu2 %84 }
  0x68   :  { %v99_v63 = vmul.f32 %v97_v28, %v85_v21 }
  0x70   :  { %v137_v22 = vpop.permute.xlu2 %136 }
  0x71   :  { %v146_v44 = vmul.f32 %v143_v33, %v137_v22 }
  0x75   :  { %v90_v23 = vpop.permute.xlu1 %89  ;;  %v95_v24 = vpop.permute.xlu0 %94 }
  0x76   :  { %v101_v31 = vmul.f32 %v97_v28, %v95_v24  ;;  %v100_v41 = vmul.f32 %v97_v28, %v90_v23 }
  0x79   :  { %v104_v25 = vpop.permute.xlu2 %103 }
  0x7a   :  { %v119_v13 = vmul.f32 %v118_v27, %v104_v25 }
  0x7e   :  { %v116_v29 = vpop.permute.xlu0 %115  ;;  %v112_v30 = vpop.permute.xlu1 %111 }
  0x7f   :  { %v122_v32 = vmul.f32 %v118_v27, %v116_v29  ;;  %v121_v37 = vmul.f32 %v118_v27, %v112_v30  ;;  %v39_v29 = vld [vmem:[%s574_s3 + $0x8] sm:$0xff]  ;;  %v40_v30 = vld [vmem:[%s574_s3 + $0x10] sm:$0xff] }
  0x81   :  { %v126_v35 = vadd.f32 %v122_v32, %v101_v31  ;;  %v125_v45 = vadd.f32 %v121_v37, %v100_v41  ;;  %v41_v31 = vld [vmem:[%s574_s3 + $0x18] sm:$0xff] }
  0x82   :  { %v162_v34 = vpop.permute.xlu2 %161 }
  0x83   :  { %v151_v43 = vadd.f32 %v147_v36, %v126_v35  ;;  %v171_v49 = vmul.f32 %v168_v38, %v162_v34  ;;  %v150_v51 = vadd.f32 %v146_v44, %v125_v45 }
  0x85   :  { %v175_v54 = vadd.f32 %v171_v49, %v150_v51 }
  0x86   :  { %v108_v39 = vpop.permute.xlu1 %107 }
  0x87   :  { %v166_v40 = vpop.permute.xlu0 %165  ;;  %v120_v61 = vmul.f32 %v118_v27, %v108_v39 }
  0x88   :  { %v172_v42 = vmul.f32 %v168_v38, %v166_v40 }
  0x89   :  { %v124_v1 = vadd.f32 %v120_v61, %v99_v63 }
  0x8a   :  { %v176_v46 = vadd.f32 %v172_v42, %v151_v43 }
  0x8b   :  { %v195_v47 = vpop.permute.xlu2 %194 }
  0x8c   :  { %v200_v48 = vadd.f32 %v195_v47, %v176_v46 }
  0x8e   :  { %v204_v50 = vmax.f32 %v200_v48, 0.0 }
  0x8f   :  { %v80_v52 = vpop.permute.xlu1 %79 }
  0x90   :  { %250 = vmatpush.msra.mxu0 %v204_v50  ;;  %353 = vmatpush.msra.mxu1 %v204_v50  ;;  %v129_v53 = vpop.permute.xlu0 %128  ;;  %v98_v17 = vmul.f32 %v97_v28, %v80_v52  ;;  %v38_v28 = vld [vmem:[%s574_s3] sm:$0xff] }
  0x91   :  { %354 = vmatpush.msra.mxu2 %v204_v50  ;;  %355 = vmatpush.msra.mxu3 %v204_v50  ;;  %v144_v21 = vmul.f32 %v143_v33, %v129_v53 }
  0x92   :  { %v123_v20 = vadd.f32 %v119_v13, %v98_v17 }
  0x93   :  { %v190_v55 = vpop.permute.xlu2 %189 }
  0x94   :  { %v199_v56 = vadd.f32 %v190_v55, %v175_v54  ;;  %v148_v23 = vadd.f32 %v144_v21, %v123_v20 }
  0x96   :  { %v203_v57 = vmax.f32 %v199_v56, 0.0 }
  0x98   :  { %251 = vmatpush.msra.mxu0 %v203_v57  ;;  %356 = vmatpush.msra.mxu1 %v203_v57  ;;  %v133_v58 = vpop.permute.xlu1 %132 }
  0x99   :  { %357 = vmatpush.msra.mxu2 %v203_v57  ;;  %358 = vmatpush.msra.mxu3 %v203_v57  ;;  %v185_v59 = vpop.permute.xlu0 %184  ;;  %v145_v0 = vmul.f32 %v143_v33, %v133_v58 }
  0x9b   :  { %v56_v60 = vpop.permute.xlu2 %55  ;;  %v149_v5 = vadd.f32 %v145_v0, %v124_v1 }
  0x9c   :  { %v67_v62 = vsub.f32 %v516_v14, %v56_v60 }
  0x9e   :  { %273 = vperm.xlu2 %388, %v67_v62  }
  0xa1   :  { %v158_v2 = vpop.permute.xlu1 %157  ;;  %v62_v4 = vpop.permute.xlu0 %61 }
  0xa2   :  { %v170_v6 = vmul.f32 %v168_v38, %v158_v2  ;;  %v70_v7 = vsub.f32 %v497_v9, %v62_v4  ;;  %v72_v9 = vrot.slane %v50_v19, 7 }
  0xa3   :  { %v60_v8 = vpop.permute.xlu2 %59 }
  0xa4   :  { %v174_v10 = vadd.f32 %v170_v6, %v149_v5  ;;  %v69_v11 = vsub.f32 %v528_v16, %v60_v8  ;;  %v74_v16 = vsub.f32 %v50_v19, %v72_v9 }
  0xa6   :  { %v198_v12 = vadd.f32 %v185_v59, %v174_v10  ;;  %283 = vperm.xlu1 %390, %v69_v11   ;;  %288 = vperm.xlu2 %388, %v70_v7  }
  0xa8   :  { %v202_v14 = vmax.f32 %v198_v12, 0.0 }
  0xa9   :  { %v154_v18 = vpop.permute.xlu1 %153  ;;  %v218_v36 = vpop.permute.xlu0 %217 }
  0xaa   :  { %252 = vmatpush.msra.mxu0 %v202_v14  ;;  %359 = vmatpush.msra.mxu1 %v202_v14  ;;  %v169_v22 = vmul.f32 %v168_v38, %v154_v18 }
  0xab   :  { %360 = vmatpush.msra.mxu2 %v202_v14  ;;  %361 = vmatpush.msra.mxu3 %v202_v14  ;;  %v213_v35 = vpop.permute.xlu2 %212  ;;  %v76_v14 = vld [vmem:[%s578_s7] sm:$0x1] }
  0xac   :  { %v173_v24 = vadd.f32 %v169_v22, %v148_v23  ;;  %vm319_vm1 = vcmp.eq.s32.totalorder %v76_v14, 1 }
  0xae   :  { %391 = vset.pattern.permute.xlu1 %v424_v3 }
  0xaf   :  { %306 = vperm.xlu1 %391, %v74_v16  }
  0xb2   :  { %v180_v25 = vpop.permute.xlu1 %179 }
  0xb3   :  { %v197_v26 = vadd.f32 %v180_v25, %v173_v24 }
  0xb5   :  { %v201_v27 = vmax.f32 %v197_v26, 0.0 }
  0xb7   :  { %253 = vmatpush.msra.mxu0 %v201_v27  ;;  %362 = vmatpush.msra.mxu1 %v201_v27 }
  0xb8   :  { %363 = vmatpush.msra.mxu2 %v201_v27  ;;  %364 = vmatpush.msra.mxu3 %v201_v27 }
  0xb9   :  { %349 = vmatmul.msk.f32.vlgmr.msra.gmra.mxu0 %vm225_vm0, %v38_v28  ;;  %350 = vmatmul.msk.f32.vlgmr.msra.gmra.mxu1 %vm225_vm0, %v39_v29 }
  0xba   :  { %351 = vmatmul.msk.f32.vlgmr.msra.gmra.mxu2 %vm225_vm0, %v40_v30  ;;  %352 = vmatmul.msk.f32.vlgmr.msra.gmra.mxu3 %vm225_vm0, %v41_v31  ;;  %v58_v32 = vpop.permute.xlu1 %57 }
  0xbb   :  { %v68_v33 = vsub.f32 %v523_v15, %v58_v32 }
  0xbd   :  { %278 = vperm.xlu0 %389, %v68_v33  }
  0xc2   :  { %v208_v34 = vpop.permute.xlu1 %207 }
  0xc5   :  { %392 = vset.pattern.permute.xlu0 %v424_v3 }
  0xca   :  { %v223_v39 = vpop.permute.xlu1 %222 }
  0xf8   :  { %v274_v44 = vpop.permute.xlu2 %273 }
 0x100   :  { %v289_v55 = vpop.permute.xlu2 %288 }
 0x118   :  { %v284_v51 = vpop.permute.xlu1 %283 }
 0x121   :  { %v307_v0 = vpop.permute.xlu1 %306 }
 0x12f   :  { %v279_v45 = vpop.permute.xlu0 %278 }
 0x136   :  { %v255_v37 = vpop.f32.mrf.mxu0  ;;  %v258_v38 = vpop.f32.mrf.mxu1 }
 0x137   :  { %v256_v40 = vadd.f32 %v255_v37, %v208_v34  ;;  %v259_v41 = vadd.f32 %v258_v38, %v213_v35 }
 0x139   :  { %v267_v42 = vmax.f32 %v256_v40, 0.0  ;;  %v268_v43 = vmax.f32 %v259_v41, 0.0 }
 0x13b   :  { %v291_v48 = vmul.f32 %v274_v44, %v267_v42  ;;  %v292_v49 = vmul.f32 %v279_v45, %v268_v43 }
 0x13d   :  { %v261_v46 = vpop.f32.mrf.mxu2  ;;  %v264_v47 = vpop.f32.mrf.mxu3  ;;  %v295_v53 = vadd.f32 %v292_v49, %v291_v48 }
 0x13e   :  { %v262_v15 = vadd.f32 %v261_v46, %v218_v36  ;;  %v265_v50 = vadd.f32 %v264_v47, %v223_v39 }
 0x140   :  { %v269_v3 = vmax.f32 %v262_v15, 0.0  ;;  %v270_v52 = vmax.f32 %v265_v50, 0.0 }
 0x142   :  { %v293_v54 = vmul.f32 %v284_v51, %v269_v3  ;;  %v294_v56 = vmul.f32 %v289_v55, %v270_v52 }
 0x144   :  { %v296_v57 = vadd.f32 %v295_v53, %v293_v54 }
 0x146   :  { %v297_v58 = vadd.f32 %v296_v57, %v294_v56 }
 0x148   :  { %v298_v59 = vrot.slane %v297_v58, 4 }
 0x14a   :  { %v299_v60 = vadd.f32 %v298_v59, %v297_v58 }
 0x14c   :  { %v300_v61 = vrot.slane %v299_v60, 2 }
 0x14e   :  { %v301_v62 = vadd.f32 %v300_v61, %v299_v60 }
 0x150   :  { %v302_v63 = vrot.slane %v301_v62, 1 }
 0x152   :  { %v303_v1 = vadd.f32 %v302_v63, %v301_v62 }
 0x154   :  { %v309_v2 = vadd.f32 %v307_v0, %v303_v1 }
 0x156   :  { %v311_v4 = vand.u32 2147483647, %v309_v2  ;;  %321 = vst [vmem:[#allocation1] sm:$0xff] %v309_v2  ;;  %v310_v11 = vmax.f32 %v309_v2, 0.0 }
 0x158   :  { %v312_v5 = vsub.f32 0.0, %v311_v4 }
 0x15a   :  { %v313_v6 = vmul.f32 1.442695, %v312_v5 }
 0x15c   :  { %393 = vpow2.f32 %v313_v6 }
 0x15d   :  { %v323_v17 = vld [vmem:[#allocation1 + $0x1] ss:$9 sm:$0xff] }
 0x15e   :  { %v325_v18 = vsel %vm319_vm1, %v323_v17, 0.0 }
 0x162   :  { %v394_v7 = vpop.eup %393 }
 0x163   :  { %v315_v8 = vadd.f32 1.0, %v394_v7 }
 0x165   :  { %395 = vlog2.f32 %v315_v8 }
 0x16b   :  { %v396_v10 = vpop.eup %395 }
 0x16c   :  { %v317_v12 = vmul.f32 0.6931472, %v396_v10 }
 0x16e   :  { %v318_v13 = vadd.f32 %v317_v12, %v310_v11 }
 0x170   :  { %327 = vst [vmem:[#allocation1] sm:$0xff] %v318_v13 }
 0x177   :  { %v329_v19 = vld [vmem:[#allocation1 + $0x1] ss:$9 sm:$0xff] }
 0x178   :  { %v331_v20 = vsub.f32 %v325_v18, %v329_v19 }
 0x17a   :  { %332 = vst [vmem:[#allocation2] sm:$0x1] %v331_v20 }
 0x17b   :  { %343 = dma.vmem_to_hbm [thread:$0]  %s339_s23, 16, %s341_s26, [#allocation3]  }
 0x17c   :  { %421 = dma.done.wait [#allocation3], 16  }
 0x17d   :  { %422 = vsyncadd [#allocation3], 4294967280 }
 0x17e   :  { %348 = vsyncpa [#allocation3], 1 }

</bundles_post_ra>
